<compile_context>
chip_gen: v7x
topology: tpu7x:2x2x1
jax: 0.10.0
libtpu: 0.0.40
codegen_flags: <defaults>
</compile_context>

<pallas_src>
import functools

import jax
import jax.numpy as jnp
from jax.experimental import pallas as pl
from jax.experimental.pallas import tpu as pltpu


def make_pos_enc_mat(seq_len: int, d_model: int) -> jnp.ndarray:
    """Exactly reproduces the PyTorch __init__ table:
         even indices -> sin(pos / 10000**(idx/d_model))
         odd  indices -> cos(pos / 10000**(idx/d_model))
       (Note: the module intentionally uses exponent idx/d_model for both the
       sin and cos channels -- non-standard but matched here on purpose.)"""
    pos = jnp.arange(seq_len, dtype=jnp.float32)[:, None]          # (S, 1)
    idx = jnp.arange(d_model, dtype=jnp.float32)[None, :]          # (1, D)
    angle = pos / jnp.power(10000.0, idx / float(d_model))         # (S, D)
    pe = jnp.where((jnp.arange(d_model) % 2) == 0,
                   jnp.sin(angle), jnp.cos(angle))
    return pe[None, :, :]                                          # (1, S, D)


def _pick_seq_tile(S: int, max_rows: int = 512) -> int:
    """Seq-axis tile: full S when small (a full-extent block is always legal),
    otherwise a multiple of 8 capped at max_rows (Pallas masks the final
    partial block when TS does not divide S)."""
    if S <= max_rows:
        return S
    return (max_rows // 8) * 8


def _pos_enc_kernel(seed_ref, x_ref, pe_ref, o_ref, *, dout_p, training):
    # x_ref / pe_ref / o_ref are (TS, D): leading batch / size-1 dims squeezed.
    y = x_ref[...] + pe_ref[...]
    if training and dout_p > 0.0:
        # Unique seed per grid step; pass (user_seed, step) as two seed words
        # so the PRNG mixes them (avoids correlated adjacent raw seeds).
        step = pl.program_id(0) * pl.num_programs(1) + pl.program_id(1)
        pltpu.prng_seed(seed_ref[0], step)
        bits = pltpu.bitcast(pltpu.prng_random_bits(y.shape), jnp.uint32)
        # Integer-threshold inverted dropout: keep iff bits >= round(p * 2^32).
        threshold = min(int(round(dout_p * float(1 << 32))), (1 << 32) - 1)
        keep = bits >= jnp.uint32(threshold)
        scale = jnp.asarray(1.0 / (1.0 - dout_p), dtype=y.dtype)
        y = jnp.where(keep, y * scale, jnp.zeros_like(y))
    o_ref[...] = y.astype(o_ref.dtype)


def positional_encoder(x, pos_enc_mat, *, dout_p=0.1, training=False, seed=0,
                       max_tile_rows=512, vmem_limit_bytes=32 * 1024 * 1024):
    """Pallas forward of PositionalEncoder: out = dropout(x + PE[:, :S, :]).

    x: (B, S, D).  pos_enc_mat: (1, S_max, D).  Dropout is identity unless
    training=True and dout_p > 0 (inverted dropout via the on-chip PRNG).
    """
    B, S, D = x.shape
    _, S_max, D_pe = pos_enc_mat.shape
    assert D == D_pe, f"d_model mismatch: x has {D}, PE table has {D_pe}"
    assert S <= S_max, f"sequence length {S} exceeds PE table length {S_max}"

    pe = pos_enc_mat[:, :S, :].astype(x.dtype)                     # (1, S, D)
    seed_arr = jnp.asarray([seed], dtype=jnp.int32)

    TS = _pick_seq_tile(S, max_tile_rows)
    n_s = pl.cdiv(S, TS)

    kernel = functools.partial(_pos_enc_kernel,
                               dout_p=float(dout_p),
                               training=bool(training))

    # PE block is constant while the inner (batch) axis varies -> single-buffer
    # it; the re-DMA is already elided by the grid ordering.
    pe_kwargs = {}
    if hasattr(pl, "Buffered"):
        pe_kwargs["pipeline_mode"] = pl.Buffered(1)

    grid_spec = pltpu.PrefetchScalarGridSpec(
        num_scalar_prefetch=1,
        grid=(n_s, B),                                             # B innermost
        in_specs=[
            pl.BlockSpec((pl.Squeezed(), TS, D),
                         lambda s, b, seed: (b, s, 0)),            # x tile
            pl.BlockSpec((pl.Squeezed(), TS, D),
                         lambda s, b, seed: (0, s, 0),             # shared PE
                         **pe_kwargs),
        ],
        out_specs=pl.BlockSpec((pl.Squeezed(), TS, D),
                               lambda s, b, seed: (b, s, 0)),
    )

    return pl.pallas_call(
        kernel,
        grid_spec=grid_spec,
        out_shape=jax.ShapeDtypeStruct((B, S, D), x.dtype),
        compiler_params=pltpu.CompilerParams(
            dimension_semantics=("parallel", "parallel"),
            vmem_limit_bytes=vmem_limit_bytes),
    )(seed_arr, x, pe)


if __name__ == "__main__":
    # Small shapes consistent with the module's forward: (B, S, d_model).
    B, S, d_model = 2, 16, 256
    seq_len_max = 64
    dout_p = 0.1

    key = jax.random.PRNGKey(0)
    x = jax.random.normal(key, (B, S, d_model), dtype=jnp.float32)
    pe_table = make_pos_enc_mat(seq_len_max, d_model)

    # Eval-mode forward (dropout is identity), matching module.eval().
    out = positional_encoder(x, pe_table, dout_p=dout_p, training=False)
    out = jax.block_until_ready(out)

    # Reference check in plain JAX.
    ref = x + pe_table[:, :S, :].astype(x.dtype)
    assert jnp.allclose(out, ref, atol=1e-5, rtol=1e-5), "mismatch vs reference"

    # Training-path smoke test only on a real TPU backend: the Mosaic PRNG
    # primitives (prng_seed / prng_random_bits) have no CPU-interpret lowering.
    if jax.default_backend() == "tpu":
        out_train = positional_encoder(x, pe_table, dout_p=dout_p,
                                       training=True, seed=1234)
        out_train = jax.block_until_ready(out_train)
        scale = 1.0 / (1.0 - dout_p)
        is_dropped = jnp.isclose(out_train, 0.0, atol=1e-6)
        is_scaled = jnp.isclose(out_train, ref * scale, atol=1e-4, rtol=1e-4)
        assert bool(jnp.all(is_dropped | is_scaled)), "dropout output malformed"

    print("KERNEL_OK")
</pallas_src>

<mosaic_0001>
module attributes {stable_mosaic.version = 11 : i64} {
  func.func @_pos_enc_kernel(%arg0: i32, %arg1: i32, %arg2: memref<1xi32, #tpu.memory_space<smem>>, %arg3: memref<1x16x256xf32, #tpu.memory_space<vmem>>, %arg4: memref<1x16x256xf32, #tpu.memory_space<vmem>>, %arg5: memref<1x16x256xf32, #tpu.memory_space<vmem>>) attributes {dimension_semantics = [#tpu.dimension_semantics<parallel>, #tpu.dimension_semantics<parallel>], iteration_bounds = array<i64: 1, 2>, scalar_prefetch = 1 : i64, scratch_operands = 0 : i64, tpu.core_type = #tpu.core_type<tc>, window_params = [{transform_indices = @transform_0, window_bounds = array<i64: 1, 16, 256>}, {pipeline_mode = #tpu.pipeline_mode<synchronous>, transform_indices = @transform_1, window_bounds = array<i64: 1, 16, 256>}, {transform_indices = @transform_2, window_bounds = array<i64: 1, 16, 256>}]} {
    %c0 = arith.constant 0 : index
    %c0_0 = arith.constant 0 : index
    %c0_1 = arith.constant 0 : index
    %0 = vector.load %arg3[%c0, %c0_0, %c0_1] : memref<1x16x256xf32, #tpu.memory_space<vmem>>, vector<1x16x256xf32>
    %1 = vector.shape_cast %0 : vector<1x16x256xf32> to vector<16x256xf32>
    %c0_2 = arith.constant 0 : index
    %c0_3 = arith.constant 0 : index
    %c0_4 = arith.constant 0 : index
    %2 = vector.load %arg4[%c0_2, %c0_3, %c0_4] : memref<1x16x256xf32, #tpu.memory_space<vmem>>, vector<1x16x256xf32>
    %3 = vector.shape_cast %2 : vector<1x16x256xf32> to vector<16x256xf32>
    %4 = arith.addf %1, %3 : vector<16x256xf32>
    %c0_5 = arith.constant 0 : index
    %c0_6 = arith.constant 0 : index
    %c0_7 = arith.constant 0 : index
    %5 = vector.load %arg5[%c0_5, %c0_6, %c0_7] : memref<1x16x256xf32, #tpu.memory_space<vmem>>, vector<1x16x256xf32>
    %6 = vector.shape_cast %5 : vector<1x16x256xf32> to vector<16x256xf32>
    %7 = vector.shape_cast %4 : vector<16x256xf32> to vector<1x16x256xf32>
    tpu.vector_store %arg5[%c0_5, %c0_6, %c0_7], %7 {strides = array<i32>} : memref<1x16x256xf32, #tpu.memory_space<vmem>>, vector<1x16x256xf32>,
    return
  }
  func.func @transform_0(%arg0: i32, %arg1: i32, %arg2: memref<1xi32, #tpu.memory_space<smem>>) -> (i32, i32, i32) {
    %c0_i32 = arith.constant 0 : i32
    %c0_i32_0 = arith.constant 0 : i32
    return %arg1, %arg0, %c0_i32 : i32, i32, i32
  }
  func.func @transform_1(%arg0: i32, %arg1: i32, %arg2: memref<1xi32, #tpu.memory_space<smem>>) -> (i32, i32, i32) {
    %c0_i32 = arith.constant 0 : i32
    %c0_i32_0 = arith.constant 0 : i32
    %c0_i32_1 = arith.constant 0 : i32
    return %c0_i32, %arg0, %c0_i32_0 : i32, i32, i32
  }
  func.func @transform_2(%arg0: i32, %arg1: i32, %arg2: memref<1xi32, #tpu.memory_space<smem>>) -> (i32, i32, i32) {
    %c0_i32 = arith.constant 0 : i32
    %c0_i32_0 = arith.constant 0 : i32
    return %arg1, %arg0, %c0_i32 : i32, i32, i32
  }
}

</mosaic_0001>

<bundles_post_ra>
// kernel: tpu_custom_call.1
= control target key start
LH: loop header
LB: loop body
LE: loop exit
PB: predicated region body
PF: predicated region fallthrough
CT: control target
= control target key end

     0   :  { %9 = vsyncpa [#allocation5], 0  ;;  %s836_s0 = inlined_call_operand.<no memory space> [shape: s32[1], index: 0, kind: input, shape index: {}]   ;;  %s837_s1 = inlined_call_operand.hbm [shape: f32[2,16,256], index: 1, kind: input, shape index: {}]   ;;  %s838_s2 = inlined_call_operand.hbm [shape: f32[1,16,256], index: 2, kind: input, shape index: {}]   ;;  %s839_s3 = inlined_call_operand.hbm [shape: f32[2,16,256], index: 3, kind: output, shape index: {}]  }
   0x1   :  { %11 = vsyncpa [#allocation5 + $0x1], 0 }
   0x2   :  { %12 = vsyncpa [#allocation8], 0 }
   0x3   :  { %13 = vsyncpa [#allocation6], 0 }
   0x4   :  { %15 = vsyncpa [#allocation6 + $0x1], 0  ;;  %s611_s12 = smov 0   ;;  %s613_s13 = smov 0  }
   0x5   :  { %s615_s14 = smov 0   ;;  %s617_s0 = smov 0  }
   0x6   :  { %s619_s15 = smov 0   ;;  %s621_s16 = smov 0  }
   0x7 LB: > { %s342_s17 = sadd.s32 4294967295, %s582_s16   ;;  %s343_s18 = sadd.s32 4294967294, %s582_s16   ;;  %s582_s16 = sphi %s621_s16, %s21_s16   ;;  %s578_s15 = sphi %s619_s15, %s863_s15   ;;  %s574_s0 = sphi %s617_s0, %s862_s0   ;;  %s570_s14 = sphi %s615_s14, %s861_s14   ;;  %s566_s13 = sphi %s613_s13, %s860_s13   ;;  %s562_s12 = sphi %s611_s12, %s859_s12  }
   0x8   : > { %p55_p0 = scmp.ne.s32.totalorder %s566_s13, %s562_s12  ;;  %p645_p1 = scmp.eq.s32.totalorder %s342_s17, 0 }
   0x9   : > { %p649_p2 = scmp.eq.s32.totalorder %s342_s17, 1  ;;  %p113_p3 = scmp.eq.s32.totalorder %s343_s18, 1 }
   0xa   : > { %s844_s19 = scalar_select %p645_p1, 1, 0 }
   0xb   : > { %s845_s20 = scalar_select %p649_p2, 1, 0 }
   0xc   : > { %p655_p4 = por %p645_p1, %p55_p0  ;;  %p344_p5 = scmp.ge.s32.totalorder %s582_s16, 1 }
   0xd   : > { %p660_p6 = por %p113_p3, %p55_p0  ;;  %p120_p7 = scmp.lt.s32.totalorder %s582_s16, 3 }
   0xe   : > { %s846_s21 = scalar_select %p655_p4, 1, 0 }
   0xf   : > { %s847_s22 = scalar_select %p660_p6, 1, 0 }
  0x10   : > { %p665_p8 = pnand %p344_p5, %p120_p7  ;;  %s584_s24 = smov [#allocation7]  }
  0x11   : > { %s136_s25 = sshll.u32 %s584_s24, 4  ;;  %s30_s27 = sadd.s32 1, %s578_s15  ;;  %s137_s25 = int_to_ptr.vmem [resolvable:$true] %s136_s25 }
  0x12   : > { %s848_s23 = scalar_select %p665_p8, 1, 0 }
  0x13   : > { %p369_p9 = pneg %p665_p8  ;;  %s438_s30 = scalar_lea.hbm %s838_s2, 512 }
  0x14   : > { %p439_p12 = scmp.ne.s32.totalorder %s838_s2, %s438_s30  ;;  %p445_p5 = scmp.lt.u32.totalorder %s438_s30, %s838_s2 }
  0x15   : > { %p674_p11 = pnand %p369_p9, %p645_p1 }
  0x17   : > { %p440_p13 = pneg %p674_p11 }
  0x19   : > { %p441_p0 = pnand %p440_p13, %p439_p12 }
  0x1b   : > { %p442_p3 = pneg %p441_p0 }
  0x1d   : > { %p447_p7 = pnand %p445_p5, %p442_p3 }
  0x1f   : > { %450 = shalt.err (!%p447_p7)
}
  0x20   : > { %s451_s8 = scalar_lea.vmem %s137_s25, 512  ;;  %p459_p1 = scmp.lt.s32.totalorder %s137_s25, %s137_s25 }
  0x21   : > { %p452_p9 = scmp.ne.s32.totalorder %s137_s25, %s451_s8  ;;  %p460_p4 = scmp.lt.s32.totalorder %s451_s8, %s451_s8 }
  0x23   : > { %p454_p10 = pnand %p452_p9, %p440_p13  ;;  %p461_p8 = por %p460_p4, %p459_p1 }
  0x25   : > { %p455_p6 = pneg %p454_p10 }
  0x27   : > { %p462_p2 = pnand %p461_p8, %p455_p6 }
  0x29   : > { %465 = shalt.err (!%p462_p2)
}
  0x2a   : > { %s585_s9 = smov 256   ;;  %s586_s10 = smov 16  }
  0x2b   : > { %372 = dma.hbm_to_vmem [thread:$0]  (!%p674_p11), %s838_s2, 512, %s137_s25, [#allocation8], %s585_s9, %s585_s9, %s586_s10  }
  0x2c   : > { %p31_p1 = scmp.ge.s32.totalorder %s30_s27, 2  ;;  %s42_s18 = sadd.s32 1, %s570_s14 }
  0x2d   : > { %p49_p2 = scmp.ne.s32.totalorder %s570_s14, %s566_s13  ;;  %p50_p4 = scmp.eq.s32.totalorder %s582_s16, 0 }
  0x2e   : > { %s865_s27 = smov (%p31_p1, %s30_s27), 0  ;;  %p851_p8 = scmp.ne.s32.totalorder %s845_s20, 0 }
  0x2f   : > { %p704_p6 = por %p50_p4, %p49_p2  ;;  %s37_s28 = ssub.s32 %s578_s15, %s865_s27 }
  0x30   : > { %p710_p10 = por %p851_p8, %p49_p2  ;;  %p382_p12 = scmp.lt.s32.totalorder %s582_s16, 2 }
  0x31   : > { %p40_p11 = scmp.eq.s32.totalorder %s37_s28, 0  ;;  %s150_s25 = sand.u32 1, %s570_s14  }
  0x32   : > { %s347_s29 = sshll.u32 %s150_s25, 5  ;;  %s359_s4 = sshll.u32 %s578_s15, 9 }
  0x33   : > { %s719_s30 = scalar_select %p40_p11, %s570_s14, %s42_s18  }
  0x34   : > { %s725_s7 = scalar_lea.hbm %s837_s1, %s359_s4  ;;  %s154_s20 = scalar_lea.vmem [#allocation4], %s347_s29 }
  0x35   : > { %s164_s8 = sshll.u32 %s154_s20, 4  ;;  %p731_p13 = pnand %p382_p12, %p704_p6  ;;  %s727_s8 = int_to_ptr.vmem [resolvable:$true] %s164_s8 }
  0x36   : > { %s735_s17 = scalar_lea.sflag [#allocation5], %s150_s25  ;;  %s466_s18 = scalar_lea.hbm %s725_s7, 512 }
  0x37   : > { %p467_p0 = scmp.ne.s32.totalorder %s725_s7, %s466_s18  ;;  %p468_p3 = pneg %p731_p13 }
  0x38   : > { %s471_s24 = scalar_lea.hbm %s837_s1, 1024  ;;  %p472_p9 = scmp.lt.u32.totalorder %s725_s7, %s837_s1 }
  0x39   : > { %p469_p5 = pnand %p468_p3, %p467_p0  ;;  %p473_p1 = scmp.lt.u32.totalorder %s471_s24, %s466_s18 }
  0x3a   : > { %p475_p4 = scmp.lt.u32.totalorder %s466_s18, %s725_s7 }
  0x3b   : > { %p470_p7 = pneg %p469_p5  ;;  %p474_p2 = por %p473_p1, %p472_p9 }
  0x3d   : > { %p476_p6 = por %p475_p4, %p474_p2 }
  0x3f   : > { %p477_p8 = pnand %p476_p6, %p470_p7 }
  0x41   : > { %480 = shalt.err (!%p477_p8)
}
  0x42   : > { %s481_s25 = scalar_lea.vmem %s727_s8, 512  ;;  %s587_s6 = smov [#allocation4]  }
  0x43   : > { %p482_p12 = scmp.ne.s32.totalorder %s727_s8, %s481_s25  ;;  %s486_s20 = sshll.u32 %s587_s6, 4  ;;  %s487_s20 = int_to_ptr.vmem [resolvable:$false] %s486_s20 }
  0x44   : > { %s488_s28 = scalar_lea.vmem %s487_s20, 1024  ;;  %p489_p5 = scmp.lt.s32.totalorder %s727_s8, %s487_s20 }
  0x45   : > { %p484_p11 = pnand %p482_p12, %p468_p3  ;;  %p490_p9 = scmp.lt.s32.totalorder %s488_s28, %s481_s25 }
  0x47   : > { %p485_p0 = pneg %p484_p11  ;;  %p491_p1 = por %p490_p9, %p489_p5 }
  0x49   : > { %p492_p2 = pnand %p491_p1, %p485_p0 }
  0x4b   : > { %495 = shalt.err (!%p492_p2)
}
  0x4c   : > { %376 = dma.hbm_to_vmem [thread:$0]  (!%p731_p13), %s725_s7, 512, %s727_s8, %s735_s17, %s585_s9, %s585_s9, %s586_s10  }
  0x4d   : > { %p854_p3 = scmp.ne.s32.totalorder %s848_s23, 0 }
  0x4e   : > { %s769_s18 = sand.u32 (!%p854_p3), 1, %s566_s13   ;;  %p855_p7 = scmp.ne.s32.totalorder (!%p854_p3), %s846_s21, 0 }
  0x4f   : > { %176 = sbr.rel (%p854_p3) target bundleno = 116 (0x74), region = 28  ;;  %s351_s29 = sshll.u32 (!%p854_p3), %s769_s18, 5 }
  0x50   : > { %s179_s24 = scalar_lea.sflag (!%p854_p3), [#allocation5], %s769_s18  ;;  %s182_s4 = scalar_lea.vmem (!%p854_p3), [#allocation4], %s351_s29 }
  0x56   : > { %549 = dma.done.wait (%p855_p7), %s179_s24, 512  }
  0x57   : > { %551 = vsyncadd (%p855_p7), %s179_s24, 4294966784  ;;  %p856_p4 = scmp.ne.s32.totalorder %s844_s19, 0 }
  0x59   : > { %553 = dma.done.wait (%p856_p4), [#allocation8], 512  }
  0x5a   : > { %555 = vsyncadd (%p856_p4), [#allocation8], 4294966784  ;;  %s206_s23 = scalar_lea.vmem [#allocation9], %s351_s29  ;;  %s360_s10 = sshll.u32 %s574_s0, 9  ;;  %v210_v0 = vld [vmem:[%s182_s4] sm:$0xff]  ;;  %v211_v2 = vld [vmem:[%s182_s4 + $0x8] sm:$0xff] }
  0x5b   : > { %s243_s9 = sshll.u32 %s206_s23, 4  ;;  %v214_v1 = vld [vmem:[#allocation7] sm:$0xff]  ;;  %v215_v4 = vld [vmem:[#allocation7 + $0x8] sm:$0xff]  ;;  %v212_v5 = vld [vmem:[%s182_s4 + $0x10] sm:$0xff]  ;;  %s787_s0 = scalar_lea.hbm %s839_s3, %s360_s10  ;;  %s782_s9 = int_to_ptr.vmem [resolvable:$true] %s243_s9 }
  0x5c   : > { %v218_v3 = vadd.f32 %v214_v1, %v210_v0  ;;  %v216_v6 = vld [vmem:[#allocation7 + $0x10] sm:$0xff]  ;;  %v219_v7 = vadd.f32 %v215_v4, %v211_v2  ;;  %v213_v9 = vld [vmem:[%s182_s4 + $0x18] sm:$0xff]  ;;  %s227_s7 = scalar_lea.sflag [#allocation6], %s769_s18  ;;  %s496_s8 = scalar_lea.vmem %s782_s9, 512 }
  0x5d   : > { %v220_v8 = vadd.f32 %v216_v6, %v212_v5  ;;  %v217_v10 = vld [vmem:[#allocation7 + $0x18] sm:$0xff]  ;;  %p497_p13 = scmp.ne.s32.totalorder %s782_s9, %s496_s8  ;;  %s588_s11 = smov [#allocation9]  }
  0x5e   : > { %222 = vst [vmem:[%s206_s23] sm:$0xff] %v218_v3  ;;  %v221_v11 = vadd.f32 %v217_v10, %v213_v9  ;;  %223 = vst [vmem:[%s206_s23 + $0x8] sm:$0xff] %v219_v7  ;;  %s500_s17 = sshll.u32 %s588_s11, 4  ;;  %s501_s17 = int_to_ptr.vmem [resolvable:$false] %s500_s17 }
  0x5f   : > { %224 = vst [vmem:[%s206_s23 + $0x10] sm:$0xff] %v220_v8  ;;  %p498_p6 = pnand %p497_p13, %p710_p10  ;;  %s502_s5 = scalar_lea.vmem %s501_s17, 1024 }
  0x60   : > { %225 = vst [vmem:[%s206_s23 + $0x18] sm:$0xff] %v221_v11  ;;  %p503_p12 = scmp.lt.s32.totalorder %s782_s9, %s501_s17  ;;  %p504_p11 = scmp.lt.s32.totalorder %s502_s5, %s496_s8 }
  0x61   : > { %p499_p8 = pneg %p498_p6 }
  0x62   : > { %p505_p0 = por %p504_p11, %p503_p12 }
  0x64   : > { %p506_p5 = pnand %p505_p0, %p499_p8 }
  0x66   : > { %509 = shalt.err (!%p506_p5)
}
  0x67   : > { %s510_s25 = scalar_lea.hbm %s787_s0, 512  ;;  %s514_s28 = scalar_lea.hbm %s839_s3, 1024 }
  0x68   : > { %p511_p9 = scmp.ne.s32.totalorder %s787_s0, %s510_s25  ;;  %p515_p3 = scmp.lt.u32.totalorder %s787_s0, %s839_s3 }
  0x69   : > { %p516_p7 = scmp.lt.u32.totalorder %s514_s28, %s510_s25  ;;  %p518_p13 = scmp.lt.u32.totalorder %s510_s25, %s787_s0 }
  0x6a   : > { %p512_p1 = pnand %p511_p9, %p710_p10 }
  0x6b   : > { %p517_p4 = por %p516_p7, %p515_p3 }
  0x6c   : > { %p513_p2 = pneg %p512_p1 }
  0x6d   : > { %p519_p6 = por %p518_p13, %p517_p4 }
  0x6f   : > { %p520_p8 = pnand %p519_p6, %p513_p2 }
  0x71   : > { %523 = shalt.err (!%p520_p8)
}
  0x72   : > { %s589_s4 = smov 256   ;;  %s590_s23 = smov 16  }
  0x73   : > { %367 = dma.vmem_to_hbm [thread:$0]  (%p710_p10), %s782_s9, 512, %s787_s0, %s227_s7, %s589_s4, %s589_s4, %s590_s23  }
  0x74 PF: > { %s258_s10 = sand.u32 1, %s562_s12   ;;  %p857_p12 = scmp.ne.s32.totalorder %s847_s22, 0 }
  0x75   : > { %p858_p11 = scmp.ge.s32.totalorder %s582_s16, 2  ;;  %s259_s19 = scalar_lea.sflag [#allocation6], %s258_s10 }
  0x77   : > { %p378_p0 = pnand %p858_p11, %p857_p12 }
  0x79   : > { %557 = dma.done.wait (!%p378_p0), %s259_s19, 512  }
  0x7a   : > { %559 = vsyncadd (!%p378_p0), %s259_s19, 4294966784  ;;  %s21_s16 = sadd.s32 1, %s582_s16   ;;  %s859_s12 = smov %s566_s13 }
  0x7b   : > { %p18_p5 = scmp.ge.s32.totalorder %s21_s16, 4   ;;  %s860_s13 = smov %s570_s14 }
  0x7c   : > { %s861_s14 = smov %s719_s30  ;;  %s862_s0 = smov %s578_s15 }
  0x7d   : > { %s863_s15 = smov %s865_s27  ;;  %20 = sbr.rel (!%p18_p5) target bundleno = 7 (0x7), region = 78 }
  0x84   :  { %264 = vsyncpa [#allocation5], 1 }
  0x85   :  { %266 = vsyncpa [#allocation5 + $0x1], 1 }
  0x86   :  { %267 = vsyncpa [#allocation8], 1 }
  0x87   :  { %268 = vsyncpa [#allocation6], 1 }
  0x88   :  { %270 = vsyncpa [#allocation6 + $0x1], 1 }

</bundles_post_ra>
